<compile_context>
chip_gen: v7x
topology: tpu7x:2x2x1
jax: 0.10.0
libtpu: 0.0.40
codegen_flags: <defaults>
</compile_context>

<pallas_src>
import jax
import jax.numpy as jnp
from jax.experimental import pallas as pl
from jax.experimental.pallas import tpu as pltpu


def _round_up(x, m):
    return ((x + m - 1) // m) * m


def _recommender_kernel(x_ref, w_ref, b_ref, o_ref):
    # Fused: MXU matmul (f32 accumulation) + bias add + LeakyReLU(0.2) on the VPU.
    # x_ref: (tm, K); w_ref: (K, tn)  -> canonical contraction, no in-kernel
    # transpose of the RHS tile.
    y = jnp.dot(x_ref[...], w_ref[...], preferred_element_type=jnp.float32)
    y = y + b_ref[...].astype(jnp.float32)
    y = jnp.where(y >= 0.0, y, 0.2 * y)
    o_ref[...] = y.astype(o_ref.dtype)


def recommender_forward(x, weight, bias, *, tm=512, tn=2048,
                        input_dtype=None, out_dtype=None):
    """Fused Linear + LeakyReLU(0.2).

    x      : (..., out_dim)
    weight : (poi_size, out_dim)   -- native PyTorch nn.Linear layout
    bias   : (poi_size,)
    returns: (..., poi_size) in `out_dtype` (default: x.dtype)

    out_dtype  : set to jnp.bfloat16 when the consumer allows it -- with K=32
                 the M*N output write dominates HBM traffic, so this is the
                 main bandwidth lever (~1.7-2x).  Accumulation stays f32.
    input_dtype: optionally cast x / weight (e.g. bf16).  This only shrinks the
                 minor read terms (grid_n*M*K + N*K bytes); it does NOT halve
                 total HBM traffic.
    tm, tn     : row / column tile sizes.  Defaults (512, 2048) work on
                 v5e/v6e/v7x; on v7x prefer tm=1024 for an 8-16 MiB output tile.
    """
    out_dim = x.shape[-1]
    poi_size = weight.shape[0]
    lead_shape = x.shape[:-1]
    if out_dtype is None:
        out_dtype = x.dtype

    x2d = x.reshape(-1, out_dim)           # (M, K)
    M, K = x2d.shape
    N = poi_size

    # Single tiny wrapper-side transpose: (poi_size, K) -> (K, poi_size).
    wt = weight.T
    if input_dtype is not None:
        x2d = x2d.astype(input_dtype)
        wt = wt.astype(input_dtype)
    b2d = bias.reshape(1, N).astype(jnp.float32)

    # Lane-dense tiles, capped to the (8,128)-rounded problem size.  Ragged
    # boundary blocks are handled by Pallas (masked boundary writes only), so
    # there is no padding and no post-kernel slice.
    tm = min(tm, _round_up(M, 8))
    tn = min(tn, _round_up(N, 128))
    grid_m = pl.cdiv(M, tm)
    grid_n = pl.cdiv(N, tn)
    # Note (v7x): when N >= 2*tn, grid_n >= 2 and megacore splits the N axis so
    # each TensorCore streams half the weight / output columns.

    in_isize = jnp.dtype(x2d.dtype).itemsize
    out_isize = jnp.dtype(out_dtype).itemsize

    # VMEM budget: double-buffered tiles + headroom, capped below v7x's 64 MiB
    # physical VMEM.  The explicit limit is required on v5e (16 MiB scoped
    # default) for the default tiling.
    tile_bytes = 2 * (tm * K * in_isize + K * tn * in_isize
                      + tn * 4 + tm * tn * out_isize)
    vmem_limit = min(tile_bytes + (8 << 20), 56 << 20)

    # Honest traffic estimate: x is streamed once per N tile (grid_n times);
    # weight / bias tiles are read once (block index constant across the inner
    # M sweep); output written once.
    cost = pl.CostEstimate(
        flops=2 * M * N * K,
        transcendentals=0,
        bytes_accessed=(grid_n * M * K * in_isize + N * K * in_isize
                        + N * 4 + M * N * out_isize),
    )

    out = pl.pallas_call(
        _recommender_kernel,
        out_shape=jax.ShapeDtypeStruct((M, N), out_dtype),
        grid_spec=pl.GridSpec(
            # N outer: weight tile stays resident across the whole M sweep.
            grid=(grid_n, grid_m),
            in_specs=[
                pl.BlockSpec((tm, K), lambda j, i: (i, 0)),   # x tile (full K)
                pl.BlockSpec((K, tn), lambda j, i: (0, j)),   # weight tile (K, tn)
                pl.BlockSpec((1, tn), lambda j, i: (0, j)),   # bias tile
            ],
            out_specs=pl.BlockSpec((tm, tn), lambda j, i: (i, j)),
        ),
        compiler_params=pltpu.CompilerParams(
            dimension_semantics=("parallel", "parallel"),
            vmem_limit_bytes=int(vmem_limit),
        ),
        cost_estimate=cost,
    )(x2d, wt, b2d)

    return out.reshape(*lead_shape, poi_size)


def reference_forward(x, weight, bias):
    y = jnp.einsum("...k,nk->...n", x, weight) + bias
    return jnp.where(y >= 0.0, y, 0.2 * y)


if __name__ == "__main__":
    # Small shapes consistent with the module:
    # (batch, seq, out_dim) -> (batch, seq, poi_size)
    batch, seq, out_dim, poi_size = 2, 8, 32, 128

    key = jax.random.PRNGKey(0)
    kx, kw, kb = jax.random.split(key, 3)

    x = jax.random.normal(kx, (batch, seq, out_dim), dtype=jnp.float32)
    # Deterministic init mimicking nn.Linear default (uniform +/- 1/sqrt(fan_in))
    bound = 1.0 / (out_dim ** 0.5)
    weight = jax.random.uniform(kw, (poi_size, out_dim), jnp.float32, -bound, bound)
    bias = jax.random.uniform(kb, (poi_size,), jnp.float32, -bound, bound)

    out = recommender_forward(x, weight, bias)
    out = jax.block_until_ready(out)

    ref = reference_forward(x, weight, bias)
    assert out.shape == (batch, seq, poi_size)
    assert jnp.allclose(out, ref, atol=1e-5, rtol=1e-5), "mismatch vs reference"

    print("KERNEL_OK")
</pallas_src>

<mosaic_0001>
module attributes {stable_mosaic.version = 11 : i64} {
  func.func @_recommender_kernel(%arg0: i32, %arg1: i32, %arg2: memref<16x32xf32, #tpu.memory_space<vmem>>, %arg3: memref<32x128xf32, #tpu.memory_space<vmem>>, %arg4: memref<1x128xf32, #tpu.memory_space<vmem>>, %arg5: memref<16x128xf32, #tpu.memory_space<vmem>>) attributes {dimension_semantics = [#tpu.dimension_semantics<parallel>, #tpu.dimension_semantics<parallel>], iteration_bounds = array<i64: 1, 1>, scalar_prefetch = 0 : i64, scratch_operands = 0 : i64, tpu.core_type = #tpu.core_type<tc>, window_params = [{transform_indices = @transform_0, window_bounds = array<i64: 16, 32>}, {transform_indices = @transform_1, window_bounds = array<i64: 32, 128>}, {transform_indices = @transform_2, window_bounds = array<i64: 1, 128>}, {transform_indices = @transform_3, window_bounds = array<i64: 16, 128>}]} {
    %c0 = arith.constant 0 : index
    %c0_0 = arith.constant 0 : index
    %0 = vector.load %arg2[%c0, %c0_0] : memref<16x32xf32, #tpu.memory_space<vmem>>, vector<16x32xf32>
    %c0_1 = arith.constant 0 : index
    %c0_2 = arith.constant 0 : index
    %1 = vector.load %arg3[%c0_1, %c0_2] : memref<32x128xf32, #tpu.memory_space<vmem>>, vector<32x128xf32>
    %cst = arith.constant dense<0.000000e+00> : vector<16x128xf32>
    %2 = tpu.matmul %0, %1, %cst {dimension_numbers = #tpu.dot_dimension_numbers<[1], [0], [0], [1], [0, 0, 1, 1], [], []>} : vector<16x32xf32>, vector<32x128xf32>, vector<16x128xf32> -> vector<16x128xf32>
    %c0_3 = arith.constant 0 : index
    %c0_4 = arith.constant 0 : index
    %3 = vector.load %arg4[%c0_3, %c0_4] : memref<1x128xf32, #tpu.memory_space<vmem>>, vector<1x128xf32>
    %4 = vector.broadcast %3 : vector<1x128xf32> to vector<16x128xf32>
    %5 = arith.addf %2, %4 : vector<16x128xf32>
    %cst_5 = arith.constant 0.000000e+00 : f32
    %6 = vector.broadcast %cst_5 : f32 to vector<16x128xf32>
    %7 = arith.cmpf oge, %5, %6 : vector<16x128xf32>
    %cst_6 = arith.constant 2.000000e-01 : f32
    %8 = vector.broadcast %cst_6 : f32 to vector<16x128xf32>
    %9 = arith.mulf %8, %5 : vector<16x128xf32>
    %10 = arith.select %7, %5, %9 : vector<16x128xi1>, vector<16x128xf32>
    %c0_7 = arith.constant 0 : index
    %c0_8 = arith.constant 0 : index
    %11 = vector.load %arg5[%c0_7, %c0_8] : memref<16x128xf32, #tpu.memory_space<vmem>>, vector<16x128xf32>
    tpu.vector_store %arg5[%c0_7, %c0_8], %10 {strides = array<i32>} : memref<16x128xf32, #tpu.memory_space<vmem>>, vector<16x128xf32>,
    return
  }
  func.func @transform_0(%arg0: i32, %arg1: i32) -> (i32, i32) {
    %c0_i32 = arith.constant 0 : i32
    %c0_i32_0 = arith.constant 0 : i32
    return %arg1, %c0_i32 : i32, i32
  }
  func.func @transform_1(%arg0: i32, %arg1: i32) -> (i32, i32) {
    %c0_i32 = arith.constant 0 : i32
    %c0_i32_0 = arith.constant 0 : i32
    return %c0_i32, %arg0 : i32, i32
  }
  func.func @transform_2(%arg0: i32, %arg1: i32) -> (i32, i32) {
    %c0_i32 = arith.constant 0 : i32
    %c0_i32_0 = arith.constant 0 : i32
    return %c0_i32, %arg0 : i32, i32
  }
  func.func @transform_3(%arg0: i32, %arg1: i32) -> (i32, i32) {
    %c0_i32 = arith.constant 0 : i32
    return %arg1, %arg0 : i32, i32
  }
}

</mosaic_0001>

<bundles_post_ra>
// kernel: tpu_custom_call.1
= control target key start
LH: loop header
LB: loop body
LE: loop exit
PB: predicated region body
PF: predicated region fallthrough
CT: control target
= control target key end

     0   :  { %8 = vsyncpa [#allocation3], 0  ;;  %s342_s0 = inlined_call_operand.hbm [shape: f32[16,32], index: 0, kind: input, shape index: {}]   ;;  %s343_s1 = inlined_call_operand.hbm [shape: f32[32,128], index: 1, kind: input, shape index: {}]   ;;  %s344_s2 = inlined_call_operand.vmem [shape: f32[1,128], index: 2, kind: input, shape index: {}]   ;;  %s345_s3 = inlined_call_operand.hbm [shape: f32[16,128], index: 3, kind: output, shape index: {}]  }
   0x1   :  { %9 = vsyncpa [#allocation6], 0 }
   0x2   :  { %10 = vsyncpa [#allocation4], 0  ;;  %s269_s12 = smov [#allocation2]   ;;  %s197_s16 = scalar_lea.hbm %s342_s0, 256 }
   0x3   :  { %s16_s13 = sshll.u32 %s269_s12, 4  ;;  %p198_p0 = scmp.ne.s32.totalorder %s342_s0, %s197_s16  ;;  %s17_s13 = int_to_ptr.vmem [resolvable:$true] %s16_s13 }
   0x4   :  { %p201_p1 = scmp.lt.u32.totalorder %s197_s16, %s342_s0 }
   0x6   :  { %p203_p2 = pnand %p201_p1, %p198_p0 }
   0x8   :  { %206 = shalt.err (!%p203_p2)
}
   0x9   :  { %s207_s21 = scalar_lea.vmem %s17_s13, 256  ;;  %p212_p4 = scmp.lt.s32.totalorder %s17_s13, %s17_s13 }
   0xa   :  { %p208_p3 = scmp.ne.s32.totalorder %s17_s13, %s207_s21  ;;  %p213_p5 = scmp.lt.s32.totalorder %s207_s21, %s207_s21 }
   0xc   :  { %p214_p6 = por %p213_p5, %p212_p4 }
   0xe   :  { %p215_p7 = pnand %p214_p6, %p208_p3 }
  0x10   :  { %218 = shalt.err (!%p215_p7)
}
  0x11   :  { %s270_s22 = smov 128   ;;  %s271_s23 = smov 8  }
  0x12   :  { %22 = dma.hbm_to_vmem [thread:$0]  %s342_s0, 256, %s17_s13, [#allocation3], %s270_s22, %s270_s22, %s271_s23  }
  0x13   :  { %s272_s26 = smov [#allocation5]   ;;  %s219_s30 = scalar_lea.hbm %s343_s1, 512 }
  0x14   :  { %s28_s27 = sshll.u32 %s272_s26, 4  ;;  %p220_p8 = scmp.ne.s32.totalorder %s343_s1, %s219_s30  ;;  %s29_s27 = int_to_ptr.vmem [resolvable:$true] %s28_s27 }
  0x15   :  { %p223_p9 = scmp.lt.u32.totalorder %s219_s30, %s343_s1 }
  0x17   :  { %p225_p10 = pnand %p223_p9, %p220_p8 }
  0x19   :  { %228 = shalt.err (!%p225_p10)
}
  0x1a   :  { %s229_s8 = scalar_lea.vmem %s29_s27, 512  ;;  %p234_p12 = scmp.lt.s32.totalorder %s29_s27, %s29_s27 }
  0x1b   :  { %p230_p11 = scmp.ne.s32.totalorder %s29_s27, %s229_s8  ;;  %p235_p13 = scmp.lt.s32.totalorder %s229_s8, %s229_s8 }
  0x1d   :  { %p236_p0 = por %p235_p13, %p234_p12 }
  0x1f   :  { %p237_p1 = pnand %p236_p0, %p230_p11 }
  0x21   :  { %240 = shalt.err (!%p237_p1)
}
  0x22   :  { %34 = dma.hbm_to_vmem [thread:$0]  %s343_s1, 512, %s29_s27, [#allocation6], %s270_s22, %s270_s22, %s271_s23  }
  0x23   :  { %263 = dma.done.wait [#allocation3], 256  }
  0x24   :  { %264 = vsyncadd [#allocation3], 4294967040 }
  0x25   :  { %265 = dma.done.wait [#allocation6], 512  }
  0x26   :  { %266 = vsyncadd [#allocation6], 4294966784  ;;  %vm56_vm0 = vcmask 261120   ;;  %v45_v0 = vld [vmem:[#allocation5] sm:$0xff]  ;;  %v46_v1 = vld [vmem:[#allocation5 + $0x8] sm:$0xff]  ;;  %s273_s11 = smov [#allocation7]  }
  0x27   :  { %v47_v2 = vld [vmem:[#allocation5 + $0x10] sm:$0xff]  ;;  %v184_v3 = vpack.c.bf16 %v46_v1, %v45_v0  ;;  %v48_v4 = vld [vmem:[#allocation5 + $0x18] sm:$0xff]  ;;  %s151_s12 = sshll.u32 %s273_s11, 4  ;;  %s152_s12 = int_to_ptr.vmem [resolvable:$true] %s151_s12 }
  0x28   :  { %v43_v5 = vld [vmem:[#allocation2] sm:$0xff]  ;;  %v188_v6 = vpack.c.bf16 %v48_v4, %v47_v2  ;;  %v44_v7 = vld [vmem:[#allocation2 + $0x8] sm:$0xff]  ;;  %s241_s13 = scalar_lea.vmem %s152_s12, 256  ;;  %p246_p3 = scmp.lt.s32.totalorder %s152_s12, %s152_s12 }
  0x29   :  { %181 = vmatprep.mubr.msk.f32.mxu0 %vm56_vm0, %v43_v5  ;;  %185 = vmatprep.subr.bf16.mxu0 %v184_v3  ;;  %v164_v8 = vld [vmem:[%s344_s2] ss:$0 sm:$0xff]  ;;  %p242_p2 = scmp.ne.s32.totalorder %s152_s12, %s241_s13  ;;  %p247_p4 = scmp.lt.s32.totalorder %s241_s13, %s241_s13 }
  0x2a   :  { %187 = vmatpush3.bf16.msra.mxu0 %v184_v3 }
  0x2b   :  { %189 = vmatprep.subr.bf16.mxu0 %v188_v6  ;;  %p248_p5 = por %p247_p4, %p246_p3 }
  0x2d   :  { %p249_p6 = pnand %p248_p5, %p242_p2 }
  0x2e   :  { %191 = vmatpush3.bf16.msra.mxu0 %v188_v6 }
  0x31   :  { %182 = vmatmul.mubr.msk.f32.vlgmr.msra.gmra.mrb[0].mxu0 %vm56_vm0, %v44_v7 }
 0x104   :  { %v183_v9 = vpop.f32.mrb[0].mxu0 }
 0x105   :  { %v135_v10 = vadd.f32 %v183_v9, %v164_v8  ;;  %v129_v11 = vpop.f32.mrb[1].mxu0 }
 0x106   :  { %v130_v12 = vadd.f32 %v164_v8, %v129_v11 }
 0x107   :  { %vm139_vm1 = vcmp.ge.f32.partialorder %v135_v10, 0.0  ;;  %v141_v13 = vmul.f32 0.2, %v135_v10 }
 0x108   :  { %vm138_vm2 = vcmp.ge.f32.partialorder %v130_v12, 0.0  ;;  %v140_v14 = vmul.f32 0.2, %v130_v12 }
 0x109   :  { %v143_v15 = vsel %vm139_vm1, %v135_v10, %v141_v13 }
 0x10a   :  { %v142_v16 = vsel %vm138_vm2, %v130_v12, %v140_v14  ;;  %145 = vst [vmem:[#allocation7 + $0x8] sm:$0xff] %v143_v15 }
 0x10b   :  { %144 = vst [vmem:[#allocation7] sm:$0xff] %v142_v16 }
 0x10c   :  { %252 = shalt.err (!%p249_p6)
}
 0x10d   :  { %s253_s15 = scalar_lea.hbm %s345_s3, 256 }
 0x10e   :  { %p254_p7 = scmp.ne.s32.totalorder %s345_s3, %s253_s15  ;;  %p257_p8 = scmp.lt.u32.totalorder %s253_s15, %s345_s3 }
 0x110   :  { %p259_p9 = pnand %p257_p8, %p254_p7 }
 0x112   :  { %262 = shalt.err (!%p259_p9)
}
 0x113   :  { %157 = dma.vmem_to_hbm [thread:$0]  %s152_s12, 256, %s345_s3, [#allocation4], %s270_s22, %s270_s22, %s271_s23  }
 0x114   :  { %267 = dma.done.wait [#allocation4], 256  }
 0x115   :  { %268 = vsyncadd [#allocation4], 4294967040 }
 0x116   :  { %161 = vsyncpa [#allocation3], 1 }
 0x117   :  { %162 = vsyncpa [#allocation6], 1 }
 0x118   :  { %163 = vsyncpa [#allocation4], 1 }

</bundles_post_ra>
